<compile_context>
chip_gen: v6e
topology: v6e:2x2x1
jax: 0.10.0
libtpu: 0.0.40
codegen_flags: <defaults>
</compile_context>

<pallas_src>
import jax
import jax.numpy as jnp
from jax.experimental import pallas as pl
from jax.experimental.pallas import tpu as pltpu


def _fc1_kernel(x_ref, w_ref, b_ref, o_ref):
    # x_ref: (TB, IN), w_ref: (IN, OUT), b_ref: (1, OUT), o_ref: (TB, OUT)
    acc = jnp.dot(x_ref[...], w_ref[...], preferred_element_type=jnp.float32)
    o_ref[...] = (acc + b_ref[...]).astype(o_ref.dtype)


def disentangler_forward(x, w, b, *, tb=1024):
    """Forward pass of `disentangler` (== fc1 only).

    x: [B, 1024]   (f32)
    w: [128, 1024] (PyTorch nn.Linear weight layout)
    b: [128]
    returns: [B, 128]
    """
    B, IN = x.shape
    OUT, IN_w = w.shape
    assert IN == IN_w, (IN, IN_w)

    # One-time, constant-foldable transpose to [IN, OUT] so the kernel body is
    # a plain MXU matmul (no per-step transpose of the resident weight).
    w_t = w.T                 # [IN, OUT] = [1024, 128]
    b2 = b.reshape(1, OUT)    # 2D bias for TPU vreg layout

    if B <= 8:
        # Single tile covering the whole (possibly sub-8) batch:
        # block == full array dim escape hatch.
        TB = B
    else:
        # Aim for >= 2 grid steps so the "parallel" batch axis can be sharded
        # across both TensorCores on v7x, capped at tb; round the tile to a
        # sublane multiple (8) for f32 tiling.
        half = -(-B // 2)                 # ceil(B / 2)
        half = ((half + 7) // 8) * 8      # round up to multiple of 8
        TB = min(tb, half)

    grid = (pl.cdiv(B, TB),)

    cp_kwargs = dict(dimension_semantics=("parallel",))
    if TB > 1024:
        # Double-buffered x tiles beyond 1024 rows exceed v5e's 16 MiB default
        # scoped VMEM; raise the limit explicitly (stays well under the 64 MiB
        # physical ceiling on v7x).
        need = 2 * TB * IN * 4 + 2 * IN * OUT * 4 + 2 * TB * OUT * 4
        cp_kwargs["vmem_limit_bytes"] = int(need * 1.5)

    out = pl.pallas_call(
        _fc1_kernel,
        out_shape=jax.ShapeDtypeStruct((B, OUT), x.dtype),
        grid_spec=pltpu.PrefetchScalarGridSpec(
            num_scalar_prefetch=0,
            grid=grid,
            in_specs=[
                # x: one batch tile per grid step (partial last block is
                # masked by Pallas — no wrapper-side padding).
                pl.BlockSpec((TB, IN), lambda i: (i, 0)),
                # weight: constant block index -> stays resident in VMEM.
                pl.BlockSpec((IN, OUT), lambda i: (0, 0)),
                # bias: constant block index -> resident.
                pl.BlockSpec((1, OUT), lambda i: (0, 0)),
            ],
            out_specs=pl.BlockSpec((TB, OUT), lambda i: (i, 0)),
        ),
        compiler_params=pltpu.CompilerParams(**cp_kwargs),
    )(x, w_t, b2)

    return out


if __name__ == "__main__":
    key = jax.random.PRNGKey(0)
    k_x, k_w, k_b = jax.random.split(key, 3)

    # Small batch; IN/OUT are fixed by the module (fc1 = Linear(1024, 128)).
    # B=20 exercises both a full tile and a partial (masked) last tile.
    B, IN, OUT = 20, 1024, 128

    # Deterministic synthetic parameters.
    # fc1 weight: kaiming_normal_(a=0, mode='fan_in') -> N(0, sqrt(2 / fan_in))
    w = jax.random.normal(k_w, (OUT, IN), dtype=jnp.float32) * jnp.sqrt(2.0 / IN)
    # fc1 bias: PyTorch default Linear bias init U(-1/sqrt(fan_in), 1/sqrt(fan_in))
    bound = 1.0 / jnp.sqrt(IN)
    b = jax.random.uniform(k_b, (OUT,), dtype=jnp.float32, minval=-bound, maxval=bound)

    x = jax.random.normal(k_x, (B, IN), dtype=jnp.float32)

    out = disentangler_forward(x, w, b)
    out = jax.block_until_ready(out)

    # Reference check in plain JAX (module forward == fc1 only).
    ref = x @ w.T + b
    assert out.shape == (B, OUT)
    assert jnp.allclose(out, ref, atol=1e-4, rtol=1e-4)

    print("KERNEL_OK")
</pallas_src>

<mosaic_0001>
module attributes {stable_mosaic.version = 11 : i64} {
  func.func @_fc1_kernel(%arg0: i32, %arg1: memref<16x1024xf32, #tpu.memory_space<vmem>>, %arg2: memref<1024x128xf32, #tpu.memory_space<vmem>>, %arg3: memref<1x128xf32, #tpu.memory_space<vmem>>, %arg4: memref<16x128xf32, #tpu.memory_space<vmem>>) attributes {dimension_semantics = [#tpu.dimension_semantics<parallel>], iteration_bounds = array<i64: 2>, scalar_prefetch = 0 : i64, scratch_operands = 0 : i64, tpu.core_type = #tpu.core_type<tc>, window_params = [{transform_indices = @transform_0, window_bounds = array<i64: 16, 1024>}, {pipeline_mode = #tpu.pipeline_mode<synchronous>, transform_indices = @transform_1, window_bounds = array<i64: 1024, 128>}, {pipeline_mode = #tpu.pipeline_mode<synchronous>, transform_indices = @transform_2, window_bounds = array<i64: 1, 128>}, {transform_indices = @transform_3, window_bounds = array<i64: 16, 128>}]} {
    %c0 = arith.constant 0 : index
    %c0_0 = arith.constant 0 : index
    %0 = vector.load %arg1[%c0, %c0_0] : memref<16x1024xf32, #tpu.memory_space<vmem>>, vector<16x1024xf32>
    %c0_1 = arith.constant 0 : index
    %c0_2 = arith.constant 0 : index
    %1 = vector.load %arg2[%c0_1, %c0_2] : memref<1024x128xf32, #tpu.memory_space<vmem>>, vector<1024x128xf32>
    %cst = arith.constant dense<0.000000e+00> : vector<16x128xf32>
    %2 = tpu.matmul %0, %1, %cst {dimension_numbers = #tpu.dot_dimension_numbers<[1], [0], [0], [1], [0, 0, 1, 1], [], []>} : vector<16x1024xf32>, vector<1024x128xf32>, vector<16x128xf32> -> vector<16x128xf32>
    %c0_3 = arith.constant 0 : index
    %c0_4 = arith.constant 0 : index
    %3 = vector.load %arg3[%c0_3, %c0_4] : memref<1x128xf32, #tpu.memory_space<vmem>>, vector<1x128xf32>
    %4 = vector.broadcast %3 : vector<1x128xf32> to vector<16x128xf32>
    %5 = arith.addf %2, %4 : vector<16x128xf32>
    %c0_5 = arith.constant 0 : index
    %c0_6 = arith.constant 0 : index
    %6 = vector.load %arg4[%c0_5, %c0_6] : memref<16x128xf32, #tpu.memory_space<vmem>>, vector<16x128xf32>
    tpu.vector_store %arg4[%c0_5, %c0_6], %5 {strides = array<i32>} : memref<16x128xf32, #tpu.memory_space<vmem>>, vector<16x128xf32>,
    return
  }
  func.func @transform_0(%arg0: i32) -> (i32, i32) {
    %c0_i32 = arith.constant 0 : i32
    %c0_i32_0 = arith.constant 0 : i32
    return %arg0, %c0_i32 : i32, i32
  }
  func.func @transform_1(%arg0: i32) -> (i32, i32) {
    %c0_i32 = arith.constant 0 : i32
    %c0_i32_0 = arith.constant 0 : i32
    %c0_i32_1 = arith.constant 0 : i32
    return %c0_i32, %c0_i32_0 : i32, i32
  }
  func.func @transform_2(%arg0: i32) -> (i32, i32) {
    %c0_i32 = arith.constant 0 : i32
    %c0_i32_0 = arith.constant 0 : i32
    %c0_i32_1 = arith.constant 0 : i32
    return %c0_i32, %c0_i32_0 : i32, i32
  }
  func.func @transform_3(%arg0: i32) -> (i32, i32) {
    %c0_i32 = arith.constant 0 : i32
    %c0_i32_0 = arith.constant 0 : i32
    return %arg0, %c0_i32 : i32, i32
  }
}

</mosaic_0001>

<bundles_post_ra>
// kernel: tpu_custom_call.1
= control target key start
LH: loop header
LB: loop body
LE: loop exit
PB: predicated region body
PF: predicated region fallthrough
CT: control target
= control target key end

     0   :  { %8 = vsyncpa [#allocation3], 0  ;;  %s1384_s0 = inlined_call_operand.hbm [shape: f32[20,1024], index: 0, kind: input, shape index: {}]   ;;  %s1385_s1 = inlined_call_operand.hbm [shape: f32[1024,128], index: 1, kind: input, shape index: {}]   ;;  %s1386_s2 = inlined_call_operand.vmem [shape: f32[1,128], index: 2, kind: input, shape index: {}]   ;;  %s1387_s3 = inlined_call_operand.hbm [shape: f32[20,128], index: 3, kind: output, shape index: {}]  }
   0x1   :  { %10 = vsyncpa [#allocation3 + $0x1], 0 }
   0x2   :  { %11 = vsyncpa [#allocation6], 0 }
   0x3   :  { %12 = vsyncpa [#allocation4], 0 }
   0x4   :  { %14 = vsyncpa [#allocation4 + $0x1], 0  ;;  %s1169_s12 = smov 0   ;;  %s1171_s13 = smov 0  }
   0x5   :  { %s1173_s14 = smov 0   ;;  %s1175_s15 = smov 0  }
   0x6 LB: > { %s1190_s16 = sadd.s32 4294967295, %s1138_s15   ;;  %s779_s17 = sadd.s32 4294967294, %s1138_s15   ;;  %s1138_s15 = sphi %s1175_s15, %s1402_s15   ;;  %s1134_s14 = sphi %s1173_s14, %s1401_s14   ;;  %s1130_s13 = sphi %s1171_s13, %s1400_s13   ;;  %s1126_s12 = sphi %s1169_s12, %s1399_s12  }
   0x7   : > { %s1194_s18 = sadd.s32 1, %s1138_s15   ;;  %s27_s19 = sadd.s32 1, %s1134_s14 }
   0x8   : > { %s24_s20 = ssub.s32 %s1138_s15, %s1194_s18  ;;  %p34_p0 = scmp.ne.s32.totalorder %s1134_s14, %s1130_s13 }
   0x9   : > { %p25_p1 = scmp.eq.s32.totalorder %s24_s20, 0  ;;  %p35_p2 = scmp.eq.s32.totalorder %s1138_s15, 0 }
   0xa   : > { %p40_p3 = scmp.ne.s32.totalorder %s1130_s13, %s1126_s12  ;;  %p41_p4 = scmp.eq.s32.totalorder %s1190_s16, 0 }
   0xb   : > { %s1206_s21 = scalar_select %p25_p1, %s1134_s14, %s27_s19  }
   0xc   : > { %p1208_p5 = por %p35_p2, %p34_p0  ;;  %p1214_p6 = por %p41_p4, %p40_p3 }
   0xd   : > { %p106_p7 = scmp.eq.s32.totalorder %s1190_s16, 1  ;;  %p112_p8 = scmp.eq.s32.totalorder %s779_s17, 1 }
   0xe   : > { %s1391_s23 = scalar_select %p1214_p6, 1, 0 }
   0xf   : > { %p780_p9 = scmp.ge.s32.totalorder %s1138_s15, 1  ;;  %p119_p10 = scmp.lt.s32.totalorder %s1138_s15, 3 }
  0x10   : > { %p1221_p11 = por %p106_p7, %p34_p0  ;;  %p1225_p12 = por %p112_p8, %p40_p3 }
  0x11   : > { %p1229_p13 = pnand %p780_p9, %p119_p10  ;;  %s1140_s27 = smov [#allocation5]  }
  0x12   : > { %s1392_s24 = scalar_select %p1221_p11, 1, 0 }
  0x13   : > { %s1393_s25 = scalar_select %p1225_p12, 1, 0 }
  0x14   : > { %p968_p1 = pneg %p1229_p13  ;;  %s131_s28 = sshll.u32 %s1140_s27, 4  ;;  %s132_s28 = int_to_ptr.vmem [resolvable:$true] %s131_s28 }
  0x15   : > { %s1029_s29 = scalar_lea.vmem %s132_s28, 16384  ;;  %p1037_p8 = scmp.lt.s32.totalorder %s132_s28, %s132_s28 }
  0x16   : > { %p969_p2 = pnand %p968_p1, %p41_p4  ;;  %p1030_p7 = scmp.ne.s32.totalorder %s132_s28, %s1029_s29 }
  0x17   : > { %p1038_p6 = scmp.lt.s32.totalorder %s1029_s29, %s1029_s29 }
  0x18   : > { %p1020_p0 = pneg %p969_p2 }
  0x19   : > { %p1039_p12 = por %p1038_p6, %p1037_p8 }
  0x1a   : > { %p1032_p11 = pnand %p1030_p7, %p1020_p0 }
  0x1c   : > { %p1033_p3 = pneg %p1032_p11 }
  0x1e   : > { %p1040_p9 = pnand %p1039_p12, %p1033_p3 }
  0x20   : > { %1043 = shalt.err (!%p1040_p9)
}
  0x21   : > { %s1141_s30 = smov 128   ;;  %s1142_s4 = smov 8  }
  0x22   : > { %971 = dma.hbm_to_vmem [thread:$0]  (!%p969_p2), %s1385_s1, 16384, %s132_s28, [#allocation6], %s1141_s30, %s1141_s30, %s1142_s4  }
  0x23   : > { %p1389_p10 = scmp.ge.s32.totalorder %s1138_s15, 2 }
  0x25   : > { %144 = sbr.rel (%p1389_p10) target bundleno = 74 (0x4a), region = 24 }
  0x2a   : > { %147 = sbr.rel (!%p1208_p5) target bundleno = 74 (0x4a), region = 28  ;;  %s148_s7 = sand.u32 (%p1208_p5), 1, %s1134_s14  }
  0x2b   : > { %s784_s8 = sshll.u32 (%p1208_p5), %s1138_s15, 1  ;;  %s783_s9 = sshll.u32 (%p1208_p5), %s148_s7, 7 }
  0x2c   : > { %s154_s10 = ssub.s32 (%p1208_p5), 3, %s784_s8  ;;  %s1250_s19 = scalar_lea.sflag (%p1208_p5), [#allocation3], %s148_s7 }
  0x2d   : > { %p155_p6 = scmp.lt.s32.totalorder (%p1208_p5), %s154_s10, 2  ;;  %s152_s20 = scalar_lea.vmem (%p1208_p5), [#allocation2], %s783_s9 }
  0x2f   : > { %s1404_s10 = smov (!%p155_p6, %s154_s10), 2 }
  0x30   : > { %s1247_s11 = sshll.u32 %s1404_s10, 10 }
  0x31   : > { %s160_s17 = ssub.s32 2048, %s1247_s11 }
  0x32   : > { %161 = vsyncadd %s1250_s19, %s160_s17  ;;  %p787_p5 = scmp.ne.s32.totalorder %s1247_s11, 0  ;;  %s808_s22 = sshll.u32 %s1138_s15, 11 }
  0x33   : > { %s1258_s29 = scalar_lea.hbm %s1384_s0, %s808_s22  ;;  %s167_s30 = sshll.u32 %s152_s20, 4  ;;  %s1260_s30 = int_to_ptr.vmem [resolvable:$true] %s167_s30 }
  0x34   : > { %s1044_s4 = scalar_lea.hbm %s1258_s29, %s1247_s11  ;;  %s1048_s7 = scalar_lea.hbm %s1384_s0, 3072 }
  0x35   : > { %p1045_p11 = scmp.ne.s32.totalorder %s1258_s29, %s1044_s4  ;;  %p1049_p2 = scmp.lt.s32.totalorder %s1258_s29, %s1384_s0 }
  0x36   : > { %p1050_p0 = scmp.lt.s32.totalorder %s1048_s7, %s1044_s4 }
  0x37   : > { %p1046_p12 = pnand %p1045_p11, %p787_p5 }
  0x38   : > { %p1051_p7 = por %p1050_p0, %p1049_p2 }
  0x39   : > { %p1047_p1 = pneg %p1046_p12 }
  0x3b   : > { %p1052_p3 = pnand %p1051_p7, %p1047_p1 }
  0x3d   : > { %1055 = shalt.err (!%p1052_p3)
}
  0x3e   : > { %s1056_s10 = scalar_lea.vmem %s1260_s30, %s1247_s11  ;;  %s1143_s17 = smov [#allocation2]  }
  0x3f   : > { %p1057_p8 = scmp.ne.s32.totalorder %s1260_s30, %s1056_s10  ;;  %s1060_s20 = sshll.u32 %s1143_s17, 4  ;;  %s1061_s20 = int_to_ptr.vmem [resolvable:$false] %s1060_s20 }
  0x40   : > { %s1062_s22 = scalar_lea.vmem %s1061_s20, 4096  ;;  %p1063_p11 = scmp.lt.s32.totalorder %s1260_s30, %s1061_s20 }
  0x41   : > { %p1058_p9 = pnand %p1057_p8, %p787_p5  ;;  %p1064_p12 = scmp.lt.s32.totalorder %s1062_s22, %s1056_s10 }
  0x43   : > { %p1059_p6 = pneg %p1058_p9  ;;  %p1065_p10 = por %p1064_p12, %p1063_p11 }
  0x45   : > { %p1066_p2 = pnand %p1065_p10, %p1059_p6 }
  0x47   : > { %1069 = shalt.err (!%p1066_p2)
}
  0x48   : > { %s1144_s27 = smov 1024   ;;  %s1145_s28 = smov 64  }
  0x49   : > { %173 = dma.hbm_to_vmem [thread:$0]  (%p787_p5), %s1258_s29, %s1247_s11, %s1260_s30, %s1250_s19, %s1144_s27, %s1144_s27, %s1145_s28  }
  0x4a PF: > { %179 = sbr.rel (%p1229_p13) target bundleno = 386 (0x182), region = 32  ;;  %s1289_s4 = sand.u32 (!%p1229_p13), 1, %s1130_s13  }
  0x4b   : > { %s793_s5 = sshll.u32 (!%p1229_p13), %s1289_s4, 7  ;;  %s182_s6 = scalar_lea.sflag (!%p1229_p13), [#allocation3], %s1289_s4 }
  0x4c   : > { %s1293_s7 = scalar_lea.vmem (!%p1229_p13), [#allocation2], %s793_s5  ;;  %p1395_p10 = scmp.ne.s32.totalorder (!%p1229_p13), %s1391_s23, 0 }
  0x4f   : > { %1113 = dma.done.wait (%p1395_p10), %s182_s6, 2048  }
  0x50   : > { %1115 = vsyncadd (%p1395_p10), %s182_s6, 4294965248 }
  0x51   : > { %1117 = dma.done.wait (%p41_p4), [#allocation6], 16384  }
  0x52   : > { %1119 = vsyncadd (%p41_p4), [#allocation6], 4294950912  ;;  %v270_v0 = vld [vmem:[#allocation5 + $0xf8] sm:$0xff]  ;;  %v269_v4 = vld [vmem:[#allocation5 + $0xf0] sm:$0xff]  ;;  %s795_s11 = sshll.u32 %s1289_s4, 4  ;;  %s677_s29 = scalar_lea.sflag [#allocation4], %s1289_s4 }
  0x53   : > { %v302_v1 = vld [vmem:[#allocation5 + $0x1f8] sm:$0xff]  ;;  %810 = vmatprep.subr.mxu0 %v270_v0  ;;  %v301_v5 = vld [vmem:[#allocation5 + $0x1f0] sm:$0xff]  ;;  %v268_v8 = vld [vmem:[#allocation5 + $0xe8] sm:$0xff]  ;;  %s211_s19 = scalar_lea.vmem [#allocation7], %s795_s11  ;;  %p1396_p4 = scmp.ne.s32.totalorder %s1392_s24, 0 }
  0x54   : > { %v254_v2 = vld [vmem:[#allocation5 + $0x78] sm:$0xff]  ;;  %848 = vmatprep.subr.mxu1 %v302_v1  ;;  %v253_v6 = vld [vmem:[#allocation5 + $0x70] sm:$0xff]  ;;  %v300_v9 = vld [vmem:[#allocation5 + $0x1e8] sm:$0xff]  ;;  %s798_s30 = sshll.u32 (%p1396_p4), %s1190_s16, 1 }
  0x55   : > { %v286_v3 = vld [vmem:[#allocation5 + $0x178] sm:$0xff]  ;;  %811 = vmatpush3.msra.mxu0 %v254_v2  ;;  %v285_v7 = vld [vmem:[#allocation5 + $0x170] sm:$0xff]  ;;  %v252_v10 = vld [vmem:[#allocation5 + $0x68] sm:$0xff]  ;;  %s685_s8 = ssub.s32 (%p1396_p4), 3, %s798_s30 }
  0x56   : > { %849 = vmatpush3.msra.mxu1 %v286_v3  ;;  %812 = vmatprep.subr.mxu0 %v269_v4  ;;  %v284_v11 = vld [vmem:[#allocation5 + $0x168] sm:$0xff]  ;;  %v267_v12 = vld [vmem:[#allocation5 + $0xe0] sm:$0xff]  ;;  %v266_v16 = vld [vmem:[#allocation5 + $0xd8] sm:$0xff]  ;;  %p686_p13 = scmp.lt.s32.totalorder (%p1396_p4), %s685_s8, 2 }
  0x57   : > { %850 = vmatprep.subr.mxu1 %v301_v5  ;;  %813 = vmatpush3.msra.mxu0 %v253_v6  ;;  %v299_v13 = vld [vmem:[#allocation5 + $0x1e0] sm:$0xff]  ;;  %v298_v17 = vld [vmem:[#allocation5 + $0x1d8] sm:$0xff]  ;;  %v265_v20 = vld [vmem:[#allocation5 + $0xd0] sm:$0xff] }
  0x58   : > { %851 = vmatpush3.msra.mxu1 %v285_v7  ;;  %814 = vmatprep.subr.mxu0 %v268_v8  ;;  %v251_v14 = vld [vmem:[#allocation5 + $0x60] sm:$0xff]  ;;  %v250_v18 = vld [vmem:[#allocation5 + $0x58] sm:$0xff]  ;;  %v297_v21 = vld [vmem:[#allocation5 + $0x1d0] sm:$0xff] }
  0x59   : > { %852 = vmatprep.subr.mxu1 %v300_v9  ;;  %v283_v15 = vld [vmem:[#allocation5 + $0x160] sm:$0xff]  ;;  %815 = vmatpush3.msra.mxu0 %v252_v10  ;;  %v282_v19 = vld [vmem:[#allocation5 + $0x158] sm:$0xff]  ;;  %v249_v22 = vld [vmem:[#allocation5 + $0x50] sm:$0xff] }
  0x5a   : > { %853 = vmatpush3.msra.mxu1 %v284_v11  ;;  %816 = vmatprep.subr.mxu0 %v267_v12  ;;  %v281_v23 = vld [vmem:[#allocation5 + $0x150] sm:$0xff]  ;;  %v264_v24 = vld [vmem:[#allocation5 + $0xc8] sm:$0xff]  ;;  %v263_v28 = vld [vmem:[#allocation5 + $0xc0] sm:$0xff] }
  0x5b   : > { %854 = vmatprep.subr.mxu1 %v299_v13  ;;  %817 = vmatpush3.msra.mxu0 %v251_v14  ;;  %v296_v25 = vld [vmem:[#allocation5 + $0x1c8] sm:$0xff]  ;;  %v295_v29 = vld [vmem:[#allocation5 + $0x1c0] sm:$0xff]  ;;  %v262_v32 = vld [vmem:[#allocation5 + $0xb8] sm:$0xff] }
  0x5c   : > { %855 = vmatpush3.msra.mxu1 %v283_v15  ;;  %818 = vmatprep.subr.mxu0 %v266_v16  ;;  %v248_v26 = vld [vmem:[#allocation5 + $0x48] sm:$0xff]  ;;  %v247_v30 = vld [vmem:[#allocation5 + $0x40] sm:$0xff]  ;;  %v294_v33 = vld [vmem:[#allocation5 + $0x1b8] sm:$0xff] }
  0x5d   : > { %856 = vmatprep.subr.mxu1 %v298_v17  ;;  %819 = vmatpush3.msra.mxu0 %v250_v18  ;;  %v280_v27 = vld [vmem:[#allocation5 + $0x148] sm:$0xff]  ;;  %v279_v31 = vld [vmem:[#allocation5 + $0x140] sm:$0xff]  ;;  %v246_v34 = vld [vmem:[#allocation5 + $0x38] sm:$0xff] }
  0x5e   : > { %857 = vmatpush3.msra.mxu1 %v282_v19  ;;  %820 = vmatprep.subr.mxu0 %v265_v20  ;;  %v278_v35 = vld [vmem:[#allocation5 + $0x138] sm:$0xff]  ;;  %v261_v36 = vld [vmem:[#allocation5 + $0xb0] sm:$0xff]  ;;  %v260_v40 = vld [vmem:[#allocation5 + $0xa8] sm:$0xff] }
  0x5f   : > { %858 = vmatprep.subr.mxu1 %v297_v21  ;;  %821 = vmatpush3.msra.mxu0 %v249_v22  ;;  %v293_v37 = vld [vmem:[#allocation5 + $0x1b0] sm:$0xff]  ;;  %v292_v41 = vld [vmem:[#allocation5 + $0x1a8] sm:$0xff]  ;;  %v259_v44 = vld [vmem:[#allocation5 + $0xa0] sm:$0xff] }
  0x60   : > { %859 = vmatpush3.msra.mxu1 %v281_v23  ;;  %822 = vmatprep.subr.mxu0 %v264_v24  ;;  %v245_v38 = vld [vmem:[#allocation5 + $0x30] sm:$0xff]  ;;  %v244_v42 = vld [vmem:[#allocation5 + $0x28] sm:$0xff]  ;;  %v291_v45 = vld [vmem:[#allocation5 + $0x1a0] sm:$0xff] }
  0x61   : > { %860 = vmatprep.subr.mxu1 %v296_v25  ;;  %823 = vmatpush3.msra.mxu0 %v248_v26  ;;  %v277_v39 = vld [vmem:[#allocation5 + $0x130] sm:$0xff]  ;;  %v276_v43 = vld [vmem:[#allocation5 + $0x128] sm:$0xff]  ;;  %v243_v46 = vld [vmem:[#allocation5 + $0x20] sm:$0xff] }
  0x62   : > { %861 = vmatpush3.msra.mxu1 %v280_v27  ;;  %824 = vmatprep.subr.mxu0 %v263_v28  ;;  %v275_v47 = vld [vmem:[#allocation5 + $0x120] sm:$0xff]  ;;  %v258_v48 = vld [vmem:[#allocation5 + $0x98] sm:$0xff]  ;;  %v257_v52 = vld [vmem:[#allocation5 + $0x90] sm:$0xff] }
  0x63   : > { %862 = vmatprep.subr.mxu1 %v295_v29  ;;  %825 = vmatpush3.msra.mxu0 %v247_v30  ;;  %v290_v49 = vld [vmem:[#allocation5 + $0x198] sm:$0xff]  ;;  %v289_v53 = vld [vmem:[#allocation5 + $0x190] sm:$0xff]  ;;  %v256_v56 = vld [vmem:[#allocation5 + $0x88] sm:$0xff] }
  0x64   : > { %863 = vmatpush3.msra.mxu1 %v279_v31  ;;  %826 = vmatprep.subr.mxu0 %v262_v32  ;;  %v242_v50 = vld [vmem:[#allocation5 + $0x18] sm:$0xff]  ;;  %v241_v54 = vld [vmem:[#allocation5 + $0x10] sm:$0xff]  ;;  %v288_v57 = vld [vmem:[#allocation5 + $0x188] sm:$0xff] }
  0x65   : > { %864 = vmatprep.subr.mxu1 %v294_v33  ;;  %827 = vmatpush3.msra.mxu0 %v246_v34  ;;  %v274_v51 = vld [vmem:[#allocation5 + $0x118] sm:$0xff]  ;;  %v273_v55 = vld [vmem:[#allocation5 + $0x110] sm:$0xff]  ;;  %v240_v58 = vld [vmem:[#allocation5 + $0x8] sm:$0xff] }
  0x66   : > { %865 = vmatpush3.msra.mxu1 %v278_v35  ;;  %828 = vmatprep.subr.mxu0 %v261_v36  ;;  %v272_v59 = vld [vmem:[#allocation5 + $0x108] sm:$0xff]  ;;  %v255_v60 = vld [vmem:[#allocation5 + $0x80] sm:$0xff]  ;;  %v226_v2 = vld [vmem:[%s1293_s7 + $0x18] sm:$0xff] }
  0x67   : > { %866 = vmatprep.subr.mxu1 %v293_v37  ;;  %829 = vmatpush3.msra.mxu0 %v245_v38  ;;  %v287_v61 = vld [vmem:[#allocation5 + $0x180] sm:$0xff]  ;;  %v224_v63 = vld [vmem:[%s1293_s7 + $0x8] sm:$0xff]  ;;  %v334_v3 = vld [vmem:[#allocation5 + $0x2f8] sm:$0xff] }
  0x68   : > { %867 = vmatpush3.msra.mxu1 %v277_v39  ;;  %830 = vmatprep.subr.mxu0 %v260_v40  ;;  %v239_v62 = vld [vmem:[#allocation5] sm:$0xff]  ;;  %v366_v4 = vld [vmem:[#allocation5 + $0x3f8] sm:$0xff]  ;;  %v225_v5 = vld [vmem:[%s1293_s7 + $0x10] sm:$0xff] }
  0x69   : > { %868 = vmatprep.subr.mxu1 %v292_v41  ;;  %831 = vmatpush3.msra.mxu0 %v244_v42  ;;  %v271_v0 = vld [vmem:[#allocation5 + $0x100] sm:$0xff]  ;;  %v318_v6 = vld [vmem:[#allocation5 + $0x278] sm:$0xff]  ;;  %v333_v8 = vld [vmem:[#allocation5 + $0x2f0] sm:$0xff] }
  0x6a   : > { %869 = vmatpush3.msra.mxu1 %v276_v43  ;;  %832 = vmatprep.subr.mxu0 %v259_v44  ;;  %v223_v1 = vld [vmem:[%s1293_s7] sm:$0xff]  ;;  %v350_v7 = vld [vmem:[#allocation5 + $0x378] sm:$0xff]  ;;  %v365_v9 = vld [vmem:[#allocation5 + $0x3f0] sm:$0xff] }
  0x6b   : > { %870 = vmatprep.subr.mxu1 %v291_v45  ;;  %833 = vmatpush3.msra.mxu0 %v243_v46  ;;  %v317_v10 = vld [vmem:[#allocation5 + $0x270] sm:$0xff]  ;;  %v332_v12 = vld [vmem:[#allocation5 + $0x2e8] sm:$0xff]  ;;  %v331_v16 = vld [vmem:[#allocation5 + $0x2e0] sm:$0xff] }
  0x6c   : > { %871 = vmatpush3.msra.mxu1 %v275_v47  ;;  %834 = vmatprep.subr.mxu0 %v258_v48  ;;  %v349_v11 = vld [vmem:[#allocation5 + $0x370] sm:$0xff]  ;;  %v364_v13 = vld [vmem:[#allocation5 + $0x3e8] sm:$0xff]  ;;  %v363_v17 = vld [vmem:[#allocation5 + $0x3e0] sm:$0xff] }
  0x6d   : > { %872 = vmatprep.subr.mxu1 %v290_v49  ;;  %835 = vmatpush3.msra.mxu0 %v242_v50  ;;  %v316_v14 = vld [vmem:[#allocation5 + $0x268] sm:$0xff]  ;;  %v315_v18 = vld [vmem:[#allocation5 + $0x260] sm:$0xff]  ;;  %v330_v20 = vld [vmem:[#allocation5 + $0x2d8] sm:$0xff] }
  0x6e   : > { %873 = vmatpush3.msra.mxu1 %v274_v51  ;;  %836 = vmatprep.subr.mxu0 %v257_v52  ;;  %v348_v15 = vld [vmem:[#allocation5 + $0x368] sm:$0xff]  ;;  %v347_v19 = vld [vmem:[#allocation5 + $0x360] sm:$0xff]  ;;  %v362_v21 = vld [vmem:[#allocation5 + $0x3d8] sm:$0xff] }
  0x6f   : > { %874 = vmatprep.subr.mxu1 %v289_v53  ;;  %837 = vmatpush3.msra.mxu0 %v241_v54  ;;  %v314_v22 = vld [vmem:[#allocation5 + $0x258] sm:$0xff]  ;;  %v329_v24 = vld [vmem:[#allocation5 + $0x2d0] sm:$0xff]  ;;  %v328_v28 = vld [vmem:[#allocation5 + $0x2c8] sm:$0xff] }
  0x70   : > { %875 = vmatpush3.msra.mxu1 %v273_v55  ;;  %838 = vmatprep.subr.mxu0 %v256_v56  ;;  %v346_v23 = vld [vmem:[#allocation5 + $0x358] sm:$0xff]  ;;  %v361_v25 = vld [vmem:[#allocation5 + $0x3d0] sm:$0xff]  ;;  %v360_v29 = vld [vmem:[#allocation5 + $0x3c8] sm:$0xff] }
  0x71   : > { %876 = vmatprep.subr.mxu1 %v288_v57  ;;  %839 = vmatpush3.msra.mxu0 %v240_v58  ;;  %v313_v26 = vld [vmem:[#allocation5 + $0x250] sm:$0xff]  ;;  %v312_v30 = vld [vmem:[#allocation5 + $0x248] sm:$0xff]  ;;  %v327_v32 = vld [vmem:[#allocation5 + $0x2c0] sm:$0xff] }
  0x72   : > { %877 = vmatpush3.msra.mxu1 %v272_v59  ;;  %840 = vmatprep.subr.mxu0 %v255_v60  ;;  %v345_v27 = vld [vmem:[#allocation5 + $0x350] sm:$0xff]  ;;  %v344_v31 = vld [vmem:[#allocation5 + $0x348] sm:$0xff]  ;;  %v359_v33 = vld [vmem:[#allocation5 + $0x3c0] sm:$0xff] }
  0x73   : > { %878 = vmatprep.subr.mxu1 %v287_v61  ;;  %841 = vmatpush3.msra.mxu0 %v239_v62  ;;  %v311_v34 = vld [vmem:[#allocation5 + $0x240] sm:$0xff]  ;;  %v326_v36 = vld [vmem:[#allocation5 + $0x2b8] sm:$0xff]  ;;  %v325_v40 = vld [vmem:[#allocation5 + $0x2b0] sm:$0xff] }
  0x74   : > { %438 = vmatprep.mubr.f32.mxu0 %v224_v63  ;;  %879 = vmatpush3.msra.mxu1 %v271_v0  ;;  %v343_v35 = vld [vmem:[#allocation5 + $0x340] sm:$0xff]  ;;  %v358_v37 = vld [vmem:[#allocation5 + $0x3b8] sm:$0xff]  ;;  %v357_v41 = vld [vmem:[#allocation5 + $0x3b0] sm:$0xff] }
  0x75   : > { %439 = vmatmul.mubr.f32.vlgmr.msra.gmra.mxu0 %v223_v1  ;;  %513 = vmatprep.mubr.f32.mxu1 %v226_v2  ;;  %v310_v38 = vld [vmem:[#allocation5 + $0x238] sm:$0xff]  ;;  %v309_v42 = vld [vmem:[#allocation5 + $0x230] sm:$0xff]  ;;  %v324_v44 = vld [vmem:[#allocation5 + $0x2a8] sm:$0xff] }
  0x76   : > { %886 = vmatprep.subr.mxu0 %v334_v3  ;;  %924 = vmatprep.subr.mxu1 %v366_v4  ;;  %v342_v39 = vld [vmem:[#allocation5 + $0x338] sm:$0xff]  ;;  %v341_v43 = vld [vmem:[#allocation5 + $0x330] sm:$0xff]  ;;  %v356_v45 = vld [vmem:[#allocation5 + $0x3a8] sm:$0xff] }
  0x77   : > { %514 = vmatmul.mubr.f32.vlgmr.msra.gmra.mxu1 %v225_v5  ;;  %887 = vmatpush3.msra.mxu0 %v318_v6  ;;  %v308_v46 = vld [vmem:[#allocation5 + $0x228] sm:$0xff]  ;;  %v323_v48 = vld [vmem:[#allocation5 + $0x2a0] sm:$0xff]  ;;  %v322_v52 = vld [vmem:[#allocation5 + $0x298] sm:$0xff] }
  0x78   : > { %925 = vmatpush3.msra.mxu1 %v350_v7  ;;  %888 = vmatprep.subr.mxu0 %v333_v8  ;;  %v340_v47 = vld [vmem:[#allocation5 + $0x328] sm:$0xff]  ;;  %v355_v49 = vld [vmem:[#allocation5 + $0x3a0] sm:$0xff]  ;;  %v354_v53 = vld [vmem:[#allocation5 + $0x398] sm:$0xff] }
  0x79   : > { %926 = vmatprep.subr.mxu1 %v365_v9  ;;  %889 = vmatpush3.msra.mxu0 %v317_v10  ;;  %v307_v50 = vld [vmem:[#allocation5 + $0x220] sm:$0xff]  ;;  %v232_v54 = vld [vmem:[%s1293_s7 + $0x48] sm:$0xff]  ;;  %v306_v55 = vld [vmem:[#allocation5 + $0x218] sm:$0xff] }
  0x7a   : > { %927 = vmatpush3.msra.mxu1 %v349_v11  ;;  %890 = vmatprep.subr.mxu0 %v332_v12  ;;  %v339_v51 = vld [vmem:[#allocation5 + $0x320] sm:$0xff]  ;;  %v338_v56 = vld [vmem:[#allocation5 + $0x318] sm:$0xff]  ;;  %v321_v58 = vld [vmem:[#allocation5 + $0x290] sm:$0xff] }
  0x7b   : > { %928 = vmatprep.subr.mxu1 %v364_v13  ;;  %891 = vmatpush3.msra.mxu0 %v316_v14  ;;  %v231_v57 = vld [vmem:[%s1293_s7 + $0x40] sm:$0xff]  ;;  %v353_v59 = vld [vmem:[#allocation5 + $0x390] sm:$0xff]  ;;  %v234_v60 = vld [vmem:[%s1293_s7 + $0x58] sm:$0xff] }
  0x7c   : > { %929 = vmatpush3.msra.mxu1 %v348_v15  ;;  %892 = vmatprep.subr.mxu0 %v331_v16  ;;  %v305_v61 = vld [vmem:[#allocation5 + $0x210] sm:$0xff]  ;;  %v320_v63 = vld [vmem:[#allocation5 + $0x288] sm:$0xff]  ;;  %v319_v4 = vld [vmem:[#allocation5 + $0x280] sm:$0xff] }
  0x7d   : > { %930 = vmatprep.subr.mxu1 %v363_v17  ;;  %893 = vmatpush3.msra.mxu0 %v315_v18  ;;  %v337_v62 = vld [vmem:[#allocation5 + $0x310] sm:$0xff]  ;;  %v352_v1 = vld [vmem:[#allocation5 + $0x388] sm:$0xff]  ;;  %v351_v5 = vld [vmem:[#allocation5 + $0x380] sm:$0xff] }
  0x7e   : > { %931 = vmatpush3.msra.mxu1 %v347_v19  ;;  %894 = vmatprep.subr.mxu0 %v330_v20  ;;  %v233_v0 = vld [vmem:[%s1293_s7 + $0x50] sm:$0xff]  ;;  %v304_v2 = vld [vmem:[#allocation5 + $0x208] sm:$0xff]  ;;  %v303_v6 = vld [vmem:[#allocation5 + $0x200] sm:$0xff] }
  0x7f   : > { %932 = vmatprep.subr.mxu1 %v362_v21  ;;  %895 = vmatpush3.msra.mxu0 %v314_v22  ;;  %v336_v3 = vld [vmem:[#allocation5 + $0x308] sm:$0xff]  ;;  %v335_v8 = vld [vmem:[#allocation5 + $0x300] sm:$0xff]  ;;  %v230_v9 = vld [vmem:[%s1293_s7 + $0x38] sm:$0xff] }
  0x80   : > { %933 = vmatpush3.msra.mxu1 %v346_v23  ;;  %896 = vmatprep.subr.mxu0 %v329_v24  ;;  %v228_v7 = vld [vmem:[%s1293_s7 + $0x28] sm:$0xff]  ;;  %v227_v10 = vld [vmem:[%s1293_s7 + $0x20] sm:$0xff]  ;;  %v229_v11 = vld [vmem:[%s1293_s7 + $0x30] sm:$0xff] }
  0x81   : > { %934 = vmatprep.subr.mxu1 %v361_v25  ;;  %897 = vmatpush3.msra.mxu0 %v313_v26  ;;  %v236_v12 = vld [vmem:[%s1293_s7 + $0x68] sm:$0xff]  ;;  %v238_v13 = vld [vmem:[%s1293_s7 + $0x78] sm:$0xff]  ;;  %v235_v14 = vld [vmem:[%s1293_s7 + $0x60] sm:$0xff] }
  0x82   : > { %935 = vmatpush3.msra.mxu1 %v345_v27  ;;  %898 = vmatprep.subr.mxu0 %v328_v28  ;;  %v237_v15 = vld [vmem:[%s1293_s7 + $0x70] sm:$0xff]  ;;  %v796_v23 = vld [vmem:[%s1386_s2] ss:$0 sm:$0xff] }
  0x83   : > { %936 = vmatprep.subr.mxu1 %v360_v29  ;;  %899 = vmatpush3.msra.mxu0 %v312_v30 }
  0x84   : > { %937 = vmatpush3.msra.mxu1 %v344_v31  ;;  %900 = vmatprep.subr.mxu0 %v327_v32 }
  0x85   : > { %938 = vmatprep.subr.mxu1 %v359_v33  ;;  %901 = vmatpush3.msra.mxu0 %v311_v34 }
  0x86   : > { %939 = vmatpush3.msra.mxu1 %v343_v35  ;;  %902 = vmatprep.subr.mxu0 %v326_v36 }
  0x87   : > { %940 = vmatprep.subr.mxu1 %v358_v37  ;;  %903 = vmatpush3.msra.mxu0 %v310_v38 }
  0x88   : > { %941 = vmatpush3.msra.mxu1 %v342_v39  ;;  %904 = vmatprep.subr.mxu0 %v325_v40 }
  0x89   : > { %942 = vmatprep.subr.mxu1 %v357_v41  ;;  %905 = vmatpush3.msra.mxu0 %v309_v42 }
  0x8a   : > { %943 = vmatpush3.msra.mxu1 %v341_v43  ;;  %906 = vmatprep.subr.mxu0 %v324_v44 }
  0x8b   : > { %944 = vmatprep.subr.mxu1 %v356_v45  ;;  %907 = vmatpush3.msra.mxu0 %v308_v46 }
  0x8c   : > { %945 = vmatpush3.msra.mxu1 %v340_v47  ;;  %908 = vmatprep.subr.mxu0 %v323_v48 }
  0x8d   : > { %946 = vmatprep.subr.mxu1 %v355_v49  ;;  %909 = vmatpush3.msra.mxu0 %v307_v50 }
  0x8e   : > { %947 = vmatpush3.msra.mxu1 %v339_v51  ;;  %910 = vmatprep.subr.mxu0 %v322_v52 }
  0x8f   : > { %948 = vmatprep.subr.mxu1 %v354_v53  ;;  %443 = vmatprep.mubr.f32.mxu0 %v232_v54 }
  0x90   : > { %911 = vmatpush3.msra.mxu0 %v306_v55  ;;  %949 = vmatpush3.msra.mxu1 %v338_v56 }
  0x91   : > { %444 = vmatmul.mubr.f32.gmra.mxu0 %v231_v57  ;;  %912 = vmatprep.subr.mxu0 %v321_v58 }
  0x92   : > { %950 = vmatprep.subr.mxu1 %v353_v59  ;;  %518 = vmatprep.mubr.f32.mxu1 %v234_v60 }
  0x93   : > { %913 = vmatpush3.msra.mxu0 %v305_v61  ;;  %951 = vmatpush3.msra.mxu1 %v337_v62 }
  0x94   : > { %914 = vmatprep.subr.mxu0 %v320_v63  ;;  %519 = vmatmul.mubr.f32.gmra.mxu1 %v233_v0 }
  0x95   : > { %952 = vmatprep.subr.mxu1 %v352_v1  ;;  %915 = vmatpush3.msra.mxu0 %v304_v2 }
  0x96   : > { %953 = vmatpush3.msra.mxu1 %v336_v3  ;;  %916 = vmatprep.subr.mxu0 %v319_v4 }
  0x97   : > { %954 = vmatprep.subr.mxu1 %v351_v5  ;;  %917 = vmatpush3.msra.mxu0 %v303_v6 }
  0x98   : > { %588 = vmatprep.mubr.f32.mxu0 %v228_v7  ;;  %955 = vmatpush3.msra.mxu1 %v335_v8 }
  0x99   : > { %663 = vmatprep.mubr.f32.mxu1 %v230_v9  ;;  %589 = vmatmul.mubr.f32.vlgmr.msra.gmra.mxu0 %v227_v10 }
  0x9a   : > { %664 = vmatmul.mubr.f32.vlgmr.msra.gmra.mxu1 %v229_v11  ;;  %593 = vmatprep.mubr.f32.mxu0 %v236_v12 }
  0x9b   : > { %668 = vmatprep.mubr.f32.mxu1 %v238_v13 }
  0x9d   : > { %594 = vmatmul.mubr.f32.gmra.mxu0 %v235_v14 }
  0x9e   : > { %669 = vmatmul.mubr.f32.gmra.mxu1 %v237_v15 }
 0x135   : > { %v842_v16 = vpop.f32.mrf.mxu0 }
 0x137   : > { %v880_v17 = vpop.f32.mrf.mxu1  ;;  %v843_v18 = vpop.f32.mrf.mxu0 }
 0x138   : > { %v844_v21 = vadd.f32 %v843_v18, %v842_v16 }
 0x139   : > { %v881_v20 = vpop.f32.mrf.mxu1 }
 0x13a   : > { %v441_v26 = vadd.f32 %v844_v21, %v796_v23  ;;  %v882_v27 = vadd.f32 %v881_v20, %v880_v17 }
 0x13c   : > { %v516_v33 = vadd.f32 %v882_v27, %v441_v26 }
 0x151   : > { %v845_v19 = vpop.f32.mrf.mxu0 }
 0x153   : > { %v846_v24 = vpop.f32.mrf.mxu0 }
 0x154   : > { %v883_v22 = vpop.f32.mrf.mxu1  ;;  %v847_v28 = vadd.f32 %v846_v24, %v845_v19 }
 0x156   : > { %v884_v25 = vpop.f32.mrf.mxu1  ;;  %v446_v34 = vadd.f32 %v847_v28, %v796_v23 }
 0x157   : > { %v885_v35 = vadd.f32 %v884_v25, %v883_v22 }
 0x159   : > { %v918_v29 = vpop.f32.mrf.mxu0  ;;  %v521_v43 = vadd.f32 %v885_v35, %v446_v34 }
 0x15a   : > { %v956_v30 = vpop.f32.mrf.mxu1 }
 0x15b   : > { %v919_v31 = vpop.f32.mrf.mxu0 }
 0x15c   : > { %v957_v32 = vpop.f32.mrf.mxu1  ;;  %v920_v36 = vadd.f32 %v919_v31, %v918_v29 }
 0x15d   : > { %v921_v37 = vpop.f32.mrf.mxu0  ;;  %v958_v40 = vadd.f32 %v957_v32, %v956_v30 }
 0x15e   : > { %v959_v38 = vpop.f32.mrf.mxu1  ;;  %v591_v39 = vadd.f32 %v920_v36, %v516_v33 }
 0x15f   : > { %v922_v41 = vpop.f32.mrf.mxu0 }
 0x160   : > { %v960_v42 = vpop.f32.mrf.mxu1  ;;  %v666_v44 = vadd.f32 %v958_v40, %v591_v39  ;;  %v923_v45 = vadd.f32 %v922_v41, %v921_v37 }
 0x161   : > { %v961_v47 = vadd.f32 %v960_v42, %v959_v38 }
 0x162   : > { %674 = vst [vmem:[%s211_s19] sm:$0xff] %v666_v44  ;;  %v596_v46 = vadd.f32 %v923_v45, %v521_v43  ;;  %683 = sbr.rel (!%p1396_p4) target bundleno = 386 (0x182), region = 44 }
 0x164   : > { %v671_v48 = vadd.f32 %v961_v47, %v596_v46 }
 0x166   : > { %675 = vst [vmem:[%s211_s19 + $0x8] sm:$0xff] %v671_v48 }
 0x167   : > { %s1406_s8 = smov (!%p686_p13, %s685_s8), 2 }
 0x168   : > { %s1327_s9 = sshll.u32 %s1406_s8, 7 }
 0x169   : > { %s690_s10 = ssub.s32 256, %s1327_s9 }
 0x16a   : > { %691 = vsyncadd %s677_s29, %s690_s10  ;;  %p800_p5 = scmp.ne.s32.totalorder %s1327_s9, 0  ;;  %s809_s17 = sshll.u32 %s1190_s16, 8 }
 0x16b   : > { %s1337_s22 = scalar_lea.hbm %s1387_s3, %s809_s17  ;;  %s696_s27 = sshll.u32 %s211_s19, 4  ;;  %s1339_s27 = int_to_ptr.vmem [resolvable:$true] %s696_s27 }
 0x16c   : > { %s1070_s28 = scalar_lea.vmem %s1339_s27, %s1327_s9  ;;  %s1146_s5 = smov [#allocation7]  }
 0x16d   : > { %p1071_p1 = scmp.ne.s32.totalorder %s1339_s27, %s1070_s28  ;;  %s1074_s6 = sshll.u32 %s1146_s5, 4  ;;  %s1075_s6 = int_to_ptr.vmem [resolvable:$false] %s1074_s6 }
 0x16e   : > { %s1076_s16 = scalar_lea.vmem %s1075_s6, 512  ;;  %p1077_p3 = scmp.lt.s32.totalorder %s1339_s27, %s1075_s6 }
 0x16f   : > { %p1072_p0 = pnand %p1071_p1, %p800_p5  ;;  %p1078_p8 = scmp.lt.s32.totalorder %s1076_s16, %s1070_s28 }
 0x171   : > { %p1073_p7 = pneg %p1072_p0  ;;  %p1079_p9 = por %p1078_p8, %p1077_p3 }
 0x173   : > { %p1080_p6 = pnand %p1079_p9, %p1073_p7 }
 0x175   : > { %1083 = shalt.err (!%p1080_p6)
}
 0x176   : > { %s1084_s7 = scalar_lea.hbm %s1337_s22, %s1327_s9  ;;  %s1088_s11 = scalar_lea.hbm %s1387_s3, 384 }
 0x177   : > { %p1085_p11 = scmp.ne.s32.totalorder %s1337_s22, %s1084_s7  ;;  %p1089_p10 = scmp.lt.s32.totalorder %s1337_s22, %s1387_s3 }
 0x178   : > { %p1090_p4 = scmp.lt.s32.totalorder %s1088_s11, %s1084_s7 }
 0x179   : > { %p1086_p12 = pnand %p1085_p11, %p800_p5 }
 0x17a   : > { %p1091_p13 = por %p1090_p4, %p1089_p10 }
 0x17b   : > { %p1087_p2 = pneg %p1086_p12 }
 0x17d   : > { %p1092_p1 = pnand %p1091_p13, %p1087_p2 }
 0x17f   : > { %1095 = shalt.err (!%p1092_p1)
}
 0x180   : > { %s1147_s8 = smov 128   ;;  %s1148_s10 = smov 8  }
 0x181   : > { %702 = dma.vmem_to_hbm [thread:$0]  (%p800_p5), %s1339_s27, %s1327_s9, %s1337_s22, %s677_s29, %s1147_s8, %s1147_s8, %s1148_s10  }
 0x182 PF: > { %s711_s17 = sand.u32 1, %s1126_s12   ;;  %p1397_p0 = scmp.ne.s32.totalorder %s1393_s25, 0 }
 0x183   : > { %p1398_p7 = scmp.ge.s32.totalorder %s1138_s15, 2  ;;  %s712_s24 = scalar_lea.sflag [#allocation4], %s711_s17 }
 0x185   : > { %p973_p3 = pnand %p1398_p7, %p1397_p0 }
 0x187   : > { %p974_p8 = pneg %p973_p3 }
 0x189   : > { %1121 = dma.done.wait (%p974_p8), %s712_s24, 256  }
 0x18a   : > { %1123 = vsyncadd (%p974_p8), %s712_s24, 4294967040  ;;  %p17_p9 = scmp.ge.s32.totalorder %s1194_s18, 4   ;;  %s1399_s12 = smov %s1130_s13 }
 0x18b   : > { %s1400_s13 = smov %s1134_s14  ;;  %s1401_s14 = smov %s1206_s21 }
 0x18c   : > { %s1402_s15 = smov %s1194_s18  ;;  %19 = sbr.rel (!%p17_p9) target bundleno = 6 (0x6), region = 81 }
 0x191   :  { %717 = vsyncpa [#allocation3], 1 }
 0x192   :  { %719 = vsyncpa [#allocation3 + $0x1], 1 }
 0x193   :  { %720 = vsyncpa [#allocation6], 1 }
 0x194   :  { %721 = vsyncpa [#allocation4], 1 }
 0x195   :  { %723 = vsyncpa [#allocation4 + $0x1], 1 }

</bundles_post_ra>
